<compile_context>
chip_gen: v5e
topology: v5e:2x2
jax: 0.10.0
libtpu: 0.0.40
codegen_flags: <defaults>
</compile_context>

<pallas_src>
import functools

import jax
import jax.numpy as jnp
from jax.experimental import pallas as pl
from jax.experimental.pallas import tpu as pltpu

MAX_TILE = 8192  # points-per-grid-step along the lane axis (multiple of 128)


# ---------------------------------------------------------------------------
# Kernels (the SDF hot path: elementwise + tiny coordinate reduction)
# ---------------------------------------------------------------------------
def _sphere_sdf_kernel(pts_ref, center_ref, radius_ref, out_ref):
    # pts_ref: (3, TILE) VMEM; center_ref: (3,) SMEM; radius_ref: (1,) SMEM
    dx = pts_ref[0:1, :] - center_ref[0]
    dy = pts_ref[1:2, :] - center_ref[1]
    dz = pts_ref[2:3, :] - center_ref[2]
    out_ref[...] = jnp.sqrt(dx * dx + dy * dy + dz * dz) - radius_ref[0]


def _box_sdf_kernel(pts_ref, center_ref, side_ref, out_ref):
    # pts_ref: (3, TILE) VMEM; center_ref: (3,) SMEM; side_ref: (3,) SMEM
    dx = jnp.abs(pts_ref[0:1, :] - center_ref[0]) - side_ref[0] * 0.5
    dy = jnp.abs(pts_ref[1:2, :] - center_ref[1]) - side_ref[1] * 0.5
    dz = jnp.abs(pts_ref[2:3, :] - center_ref[2]) - side_ref[2] * 0.5
    px = jnp.maximum(dx, 0.0)
    py = jnp.maximum(dy, 0.0)
    pz = jnp.maximum(dz, 0.0)
    outside = jnp.sqrt(px * px + py * py + pz * pz)
    inside = jnp.minimum(jnp.maximum(jnp.maximum(dx, dy), dz), 0.0)
    out_ref[...] = outside + inside


def _torus_sdf_kernel(pts_ref, center_ref, radii_ref, out_ref):
    # pts_ref: (3, TILE) VMEM; center_ref: (3,) SMEM; radii_ref: (2,) SMEM [R, r]
    dx = pts_ref[0:1, :] - center_ref[0]
    dy = pts_ref[1:2, :] - center_ref[1]
    dz = pts_ref[2:3, :] - center_ref[2]
    xy = jnp.sqrt(dx * dx + dy * dy) - radii_ref[0]
    out_ref[...] = jnp.sqrt(xy * xy + dz * dz) - radii_ref[1]


# ---------------------------------------------------------------------------
# Wrapper (glue: transpose + fused pad + pallas_call)
# ---------------------------------------------------------------------------
def _round_up(x, m):
    return ((x + m - 1) // m) * m


def _run_tiled(kernel, pts_t, param_args, n_pad, tile):
    grid = (n_pad // tile,)
    smem_spec = pl.BlockSpec(memory_space=pltpu.MemorySpace.SMEM)
    return pl.pallas_call(
        kernel,
        out_shape=jax.ShapeDtypeStruct((1, n_pad), jnp.float32),
        grid=grid,
        in_specs=[pl.BlockSpec((3, tile), lambda i: (0, i))]
        + [smem_spec] * len(param_args),
        out_specs=pl.BlockSpec((1, tile), lambda i: (0, i)),
        compiler_params=pltpu.CompilerParams(
            dimension_semantics=("parallel",)),
    )(pts_t, *param_args)


@functools.partial(jax.jit, static_argnames=("sdf_type",))
def sdf_surface_forward(points, params, sdf_type="sphere"):
    """Equivalent of SDFSurface.forward(points): signed distances, shape (N, 1)."""
    pts = points.reshape(-1, 3).astype(jnp.float32)    # torch .view(-1, 3)
    n = pts.shape[0]

    # Lane-dense tiling: cap the tile for small clouds, otherwise use big tiles.
    tile = min(MAX_TILE, _round_up(n, 128))
    n_pad = _round_up(n, tile)

    # Transpose-then-pad in one fused pass (coordinate-major, point index -> lanes).
    pts_t = jnp.pad(pts.T, ((0, 0), (0, n_pad - n)))   # (3, n_pad)

    if sdf_type == "sphere":
        center = params["center"].reshape(-1).astype(jnp.float32)   # (3,)
        radius = params["radius"].reshape(-1).astype(jnp.float32)   # (1,)
        out = _run_tiled(_sphere_sdf_kernel, pts_t, (center, radius), n_pad, tile)
    elif sdf_type == "box":
        center = params["center"].reshape(-1).astype(jnp.float32)         # (3,)
        side = params["side_lengths"].reshape(-1).astype(jnp.float32)     # (3,)
        out = _run_tiled(_box_sdf_kernel, pts_t, (center, side), n_pad, tile)
    elif sdf_type == "torus":
        center = params["center"].reshape(-1).astype(jnp.float32)   # (3,)
        radii = params["radii"].reshape(-1).astype(jnp.float32)     # (2,)
        out = _run_tiled(_torus_sdf_kernel, pts_t, (center, radii), n_pad, tile)
    else:
        raise ValueError(f"unknown sdf type: {sdf_type}")

    # Padded lanes hold garbage distances; slice them off, match torch .unsqueeze(-1).
    return out[0, :n].reshape(n, 1)


# ---------------------------------------------------------------------------
# Pure-JAX references (correctness check only)
# ---------------------------------------------------------------------------
def _ref_sphere(points, params):
    p = points.reshape(-1, 3)
    return (jnp.linalg.norm(p - params["center"][None, :], axis=-1, keepdims=True)
            - params["radius"])


def _ref_box(points, params):
    p = points.reshape(-1, 3)
    diff = jnp.abs(p - params["center"][None, :]) - params["side_lengths"][None, :] / 2.0
    sd = (jnp.linalg.norm(jnp.maximum(diff, 0.0), axis=-1)
          + jnp.minimum(jnp.max(diff, axis=-1), 0.0))
    return sd[:, None]


def _ref_torus(points, params):
    p = points.reshape(-1, 3)
    diff = p - params["center"][None, :]
    q = jnp.stack([jnp.linalg.norm(diff[:, :2], axis=-1) - params["radii"][0],
                   diff[:, 2]], axis=-1)
    return (jnp.linalg.norm(q, axis=-1) - params["radii"][1])[:, None]


if __name__ == "__main__":
    key = jax.random.PRNGKey(0)
    k1, k2 = jax.random.split(key)
    # Small cloud (N=100, exercises padding + tile cap) and a larger one
    # (N=16384, exercises multi-step grid with 8192-lane tiles).
    points_small = jax.random.normal(k1, (2, 50, 3), dtype=jnp.float32) * 2.0
    points_big = jax.random.normal(k2, (4, 4096, 3), dtype=jnp.float32) * 2.0

    sphere_params = {"center": jnp.array([0.0, 0.0, 2.0], jnp.float32),
                     "radius": jnp.array(1.0, jnp.float32)}
    box_params = {"center": jnp.array([0.0, 0.0, 2.0], jnp.float32),
                  "side_lengths": jnp.array([1.5, 1.0, 1.2], jnp.float32)}
    torus_params = {"center": jnp.array([0.0, 0.0, 2.0], jnp.float32),
                    "radii": jnp.array([1.0, 0.25], jnp.float32)}
    # SDFSurface.feature parameter (ones, shape (1, 3)); unused by forward().
    feature = jnp.ones((1, 3), jnp.float32)
    # TODO(synk): get_color() (feature broadcast / rainbow clamp) is trivial elementwise
    # glue and not part of forward(); left as plain JAX outside the kernel.

    ok = True
    for points in (points_small, points_big):
        n = points.reshape(-1, 3).shape[0]
        for sdf_type, params, ref_fn in (("sphere", sphere_params, _ref_sphere),
                                         ("box", box_params, _ref_box),
                                         ("torus", torus_params, _ref_torus)):
            out = sdf_surface_forward(points, params, sdf_type=sdf_type)
            jax.block_until_ready(out)
            ref = ref_fn(points, params)
            if out.shape != (n, 1) or not jnp.allclose(out, ref, atol=1e-5, rtol=1e-5):
                ok = False

    if ok:
        print("KERNEL_OK")
</pallas_src>

<mosaic_0001>
module attributes {stable_mosaic.version = 11 : i64} {
  func.func @_sphere_sdf_kernel(%arg0: i32, %arg1: memref<3x128xf32, #tpu.memory_space<vmem>>, %arg2: memref<3xf32, #tpu.memory_space<smem>>, %arg3: memref<1xf32, #tpu.memory_space<smem>>, %arg4: memref<1x128xf32, #tpu.memory_space<vmem>>) attributes {dimension_semantics = [#tpu.dimension_semantics<parallel>], iteration_bounds = array<i64: 1>, scalar_prefetch = 0 : i64, scratch_operands = 0 : i64, tpu.core_type = #tpu.core_type<tc>, window_params = [{transform_indices = @transform_0, window_bounds = array<i64: 3, 128>}, {transform_indices = @transform_1, window_bounds = array<i64: 3>}, {transform_indices = @transform_2, window_bounds = array<i64: 1>}, {transform_indices = @transform_3, window_bounds = array<i64: 1, 128>}]} {
    %c0 = arith.constant 0 : index
    %c0_0 = arith.constant 0 : index
    %0 = vector.load %arg1[%c0, %c0_0] : memref<3x128xf32, #tpu.memory_space<vmem>>, vector<1x128xf32>
    %c0_1 = arith.constant 0 : index
    %1 = memref.load %arg2[%c0_1] : memref<3xf32, #tpu.memory_space<smem>>
    %2 = vector.broadcast %1 : f32 to vector<1x128xf32>
    %3 = arith.subf %0, %2 : vector<1x128xf32>
    %c1 = arith.constant 1 : index
    %c0_2 = arith.constant 0 : index
    %4 = vector.load %arg1[%c1, %c0_2] : memref<3x128xf32, #tpu.memory_space<vmem>>, vector<1x128xf32>
    %c1_3 = arith.constant 1 : index
    %5 = memref.load %arg2[%c1_3] : memref<3xf32, #tpu.memory_space<smem>>
    %6 = vector.broadcast %5 : f32 to vector<1x128xf32>
    %7 = arith.subf %4, %6 : vector<1x128xf32>
    %c2 = arith.constant 2 : index
    %c0_4 = arith.constant 0 : index
    %8 = vector.load %arg1[%c2, %c0_4] : memref<3x128xf32, #tpu.memory_space<vmem>>, vector<1x128xf32>
    %c2_5 = arith.constant 2 : index
    %9 = memref.load %arg2[%c2_5] : memref<3xf32, #tpu.memory_space<smem>>
    %10 = vector.broadcast %9 : f32 to vector<1x128xf32>
    %11 = arith.subf %8, %10 : vector<1x128xf32>
    %12 = arith.mulf %3, %3 : vector<1x128xf32>
    %13 = arith.mulf %7, %7 : vector<1x128xf32>
    %14 = arith.addf %12, %13 : vector<1x128xf32>
    %15 = arith.mulf %11, %11 : vector<1x128xf32>
    %16 = arith.addf %14, %15 : vector<1x128xf32>
    %17 = math.sqrt %16 : vector<1x128xf32>
    %c0_6 = arith.constant 0 : index
    %18 = memref.load %arg3[%c0_6] : memref<1xf32, #tpu.memory_space<smem>>
    %19 = vector.broadcast %18 : f32 to vector<1x128xf32>
    %20 = arith.subf %17, %19 : vector<1x128xf32>
    %c0_7 = arith.constant 0 : index
    %c0_8 = arith.constant 0 : index
    %21 = vector.load %arg4[%c0_7, %c0_8] : memref<1x128xf32, #tpu.memory_space<vmem>>, vector<1x128xf32>
    tpu.vector_store %arg4[%c0_7, %c0_8], %20 {strides = array<i32>} : memref<1x128xf32, #tpu.memory_space<vmem>>, vector<1x128xf32>,
    return
  }
  func.func @transform_0(%arg0: i32) -> (i32, i32) {
    %c0_i32 = arith.constant 0 : i32
    %c0_i32_0 = arith.constant 0 : i32
    return %c0_i32, %arg0 : i32, i32
  }
  func.func @transform_1(%arg0: i32) -> i32 {
    %c0_i32 = arith.constant 0 : i32
    %c0_i32_0 = arith.constant 0 : i32
    return %c0_i32 : i32
  }
  func.func @transform_2(%arg0: i32) -> i32 {
    %c0_i32 = arith.constant 0 : i32
    %c0_i32_0 = arith.constant 0 : i32
    return %c0_i32 : i32
  }
  func.func @transform_3(%arg0: i32) -> (i32, i32) {
    %c0_i32 = arith.constant 0 : i32
    %c0_i32_0 = arith.constant 0 : i32
    return %c0_i32, %arg0 : i32, i32
  }
}

</mosaic_0001>

<bundles_post_ra>
// kernel: sdf_surface_forward.1
= control target key start
LH: loop header
LB: loop body
LE: loop exit
PB: predicated region body
PF: predicated region fallthrough
CT: control target
= control target key end

     0   :  { %9 = vsyncpa [#allocation4], 0  ;;  %s85_s15 = smov [#allocation3]   ;;  %s124_s0 = inlined_call_operand.vmem [shape: f32[3,128], index: 0, kind: input, shape index: {}]   ;;  %s125_s1 = inlined_call_operand.vmem [shape: f32[3], index: 1, kind: input, shape index: {}]   ;;  %s126_s2 = inlined_call_operand.<no memory space> [shape: f32[1], index: 2, kind: input, shape index: {}]   ;;  %s127_s3 = inlined_call_operand.vmem [shape: f32[1,128], index: 3, kind: output, shape index: {}]  }
   0x1   :  { %s17_s14 = sshll.u32 %s125_s1, 4  ;;  %s18_s14 = int_to_ptr.vmem [resolvable:$true] %s17_s14 }
   0x2   :  { %20 = dma.vmem_to_smem %s18_s14, 16, %s85_s15, [#allocation4]  }
   0x3   :  { %83 = dma.done.wait [#allocation4], 16  }
   0x4   :  { %84 = vsyncadd [#allocation4], 4294967280 }
   0x5   :  { %27 = sfence }
   0x6   :  { %s29_s16 = sld [smem:[#allocation3]]  ;;  %v28_v0 = vld [vmem:[%s124_s0] sm:$0x1]  ;;  %v32_v1 = vld [vmem:[%s124_s0 + $0x1] sm:$0x1]  ;;  %v58_v22 = vstv %s126_s2 }
   0x7   :  { %s66_s17 = sld [smem:[#allocation3 + $0x1]]  ;;  %v36_v3 = vld [vmem:[%s124_s0 + $0x2] sm:$0x1] }
   0x8   :  { %s67_s18 = sld [smem:[#allocation3 + $0x2]] }
   0xc   :  { %v30_v2 = vstv %s29_s16 }
   0xd   :  { %v31_v4 = vsub.f32 %v28_v0, %v30_v2  ;;  %v34_v5 = vstv %s66_s17 }
   0xe   :  { %v35_v6 = vsub.f32 %v32_v1, %v34_v5  ;;  %v38_v7 = vstv %s67_s18 }
   0xf   :  { %v39_v8 = vsub.f32 %v36_v3, %v38_v7  ;;  %v40_v9 = vmul.f32 %v31_v4, %v31_v4 }
  0x10   :  { %v41_v10 = vmul.f32 %v35_v6, %v35_v6 }
  0x11   :  { %v43_v11 = vmul.f32 %v39_v8, %v39_v8 }
  0x12   :  { %v42_v12 = vadd.f32 %v41_v10, %v40_v9 }
  0x14   :  { %v44_v13 = vadd.f32 %v43_v11, %v42_v12 }
  0x16   :  { %69 = vrsqrt.f32 %v44_v13  ;;  %vm52_vm0 = vcmp.eq.f32.partialorder %v44_v13, inf  ;;  %v55_v20 = vand.u32 2147483648, %v44_v13  ;;  %vm54_vm1 = vcmp.eq.f32.partialorder %v44_v13, 0.0 }
  0x1c   :  { %v70_v14 = vpop.eup %69 }
  0x1d   :  { %v46_v15 = vmul.f32 %v70_v14, %v44_v13 }
  0x1f   :  { %v47_v16 = vmul.f32 %v70_v14, %v46_v15 }
  0x21   :  { %v48_v17 = vmul.f32 0.5, %v47_v16 }
  0x23   :  { %v49_v18 = vsub.f32 1.5, %v48_v17 }
  0x25   :  { %v50_v19 = vmul.f32 %v70_v14, %v49_v18 }
  0x27   :  { %v51_v21 = vmul.f32 %v50_v19, %v44_v13 }
  0x29   :  { %v53_v23 = vsel %vm52_vm0, %v44_v13, %v51_v21 }
  0x2a   :  { %v56_v24 = vsel %vm54_vm1, %v55_v20, %v53_v23 }
  0x2b   :  { %v59_v25 = vsub.f32 %v56_v24, %v58_v22 }
  0x2d   :  { %60 = vst [vmem:[%s127_s3] sm:$0x1] %v59_v25 }
  0x2e   :  { %65 = vsyncpa [#allocation4], 1 }

</bundles_post_ra>
